<compile_context>
chip_gen: v5e
topology: v5e:2x2
jax: 0.10.0
libtpu: 0.0.40
codegen_flags: <defaults>
</compile_context>

<pallas_src>
import numpy as np
import jax
import jax.numpy as jnp
from jax.experimental import pallas as pl
from jax.experimental.pallas import tpu as pltpu


# ------------- graph utilities (parameter construction, plain numpy) -------------
def k_adjacency(A, k, with_self=False, self_factor=1):
    I = np.eye(len(A), dtype=A.dtype)
    if k == 0:
        return I
    Ak = np.minimum(np.linalg.matrix_power(A + I, k), 1) \
       - np.minimum(np.linalg.matrix_power(A + I, k - 1), 1)
    if with_self:
        Ak = Ak + self_factor * I
    return Ak


def normalize_adjacency_matrix(A):
    node_degrees = A.sum(-1)
    degs_inv_sqrt = np.power(node_degrees, -0.5)
    norm_degs_matrix = np.eye(len(node_degrees)) * degs_inv_sqrt
    return (norm_degs_matrix @ A @ norm_degs_matrix).astype(np.float32)


def build_A_powers(A_binary, num_scales):
    # disentangled_agg=True branch of MultiScale_GraphConv.__init__
    A_powers = [k_adjacency(A_binary, k, with_self=True) for k in range(num_scales)]
    return np.concatenate([normalize_adjacency_matrix(g) for g in A_powers], axis=0)


# --------------------------------- Pallas kernel ---------------------------------
def _msgcn_kernel(x_ref, k_ref, b_ref, o_ref):
    # x_ref: (TB, V*C)   k_ref: (V*C, V*O)   b_ref: (1, V*O) f32   o_ref: (TB, V*O)
    acc = jnp.dot(x_ref[...], k_ref[...], preferred_element_type=jnp.float32)
    acc = acc + b_ref[...]
    o_ref[...] = jnp.maximum(acc, 0.0).astype(o_ref.dtype)     # ReLU


def _round_up(a, b):
    return (a + b - 1) // b * b


def multiscale_graphconv(x, A_powers, A_res, W_conv, b_conv, *, num_scales,
                         bn_gamma, bn_beta, bn_mean, bn_var, bn_eps=1e-5,
                         tile_rows=1024, compute_dtype=None):
    """x: (N, C, T, V) NCHW (PyTorch convention). Returns (N, out_channels, T, V).

    compute_dtype: set to jnp.bfloat16 on v6e/v7x to halve operand bytes
    (accumulation stays f32, bias/ReLU stay f32).
    """
    N, C, T, V = x.shape
    S = num_scales
    O = W_conv.shape[0]
    NT = N * T

    # ---------------- weight-only preprocessing (O(1) in batch size) ----------------
    # Fold eval-mode BatchNorm2d into the 1x1 conv.
    scale = bn_gamma / jnp.sqrt(bn_var + bn_eps)               # (O,)
    W_f = W_conv * scale[:, None]                              # (O, S*C)
    b_f = (b_conv - bn_mean) * scale + bn_beta                 # (O,)
    # Fold the masked multi-scale adjacency and the folded conv into one operator:
    #   Kop[(u,c),(v,o)] = sum_s A_s[v,u] * W_f[o, s*C+c]
    A3 = (A_powers + A_res).reshape(S, V, V)                   # A3[s, v, u]
    W3 = W_f.reshape(O, S, C)                                  # W3[o, s, c]
    Kop = jnp.einsum('svu,osc->ucvo', A3, W3).reshape(V * C, V * O)
    bias_row = jnp.tile(b_f, (V,)).reshape(1, V * O).astype(jnp.float32)

    # -------------- lane-dense data layout: rows = (n,t), cols = (u,c) --------------
    x_k = jnp.transpose(x, (0, 2, 3, 1)).reshape(NT, V * C)    # x_k[n*T+t, u*C+c]

    # Row-tile size: large tiles amortize per-step pipeline overhead; keep several
    # grid steps (megacore sharding + DMA/compute overlap) when the batch allows.
    TB = _round_up(min(tile_rows, NT), 8)
    if pl.cdiv(NT, TB) < 8 and NT > 64:
        TB = _round_up(pl.cdiv(NT, 8), 8)
    NT_pad = _round_up(NT, TB)
    if NT_pad != NT:
        x_k = jnp.pad(x_k, ((0, NT_pad - NT), (0, 0)))

    if compute_dtype is not None:                              # bf16 path (v6e/v7x)
        x_k = x_k.astype(compute_dtype)
        Kop = Kop.astype(compute_dtype)

    out_dtype = x.dtype
    in_bytes = (x_k.size * x_k.dtype.itemsize
                + Kop.size * Kop.dtype.itemsize
                + bias_row.size * 4)
    out_bytes = NT_pad * V * O * jnp.dtype(out_dtype).itemsize
    cost = pl.CostEstimate(flops=2 * NT_pad * (V * C) * (V * O),
                           transcendentals=0,
                           bytes_accessed=int(in_bytes + out_bytes))

    out_k = pl.pallas_call(
        _msgcn_kernel,
        out_shape=jax.ShapeDtypeStruct((NT_pad, V * O), out_dtype),
        grid_spec=pltpu.PrefetchScalarGridSpec(
            num_scalar_prefetch=0,
            grid=(NT_pad // TB,),
            in_specs=[
                pl.BlockSpec((TB, V * C), lambda i: (i, 0)),       # x row tile
                pl.BlockSpec((V * C, V * O), lambda i: (0, 0)),    # fused operator
                pl.BlockSpec((1, V * O), lambda i: (0, 0)),        # fused bias
            ],
            out_specs=pl.BlockSpec((TB, V * O), lambda i: (i, 0)),
        ),
        compiler_params=pltpu.CompilerParams(dimension_semantics=("parallel",)),
        cost_estimate=cost,
    )(x_k, Kop, bias_row)

    out_k = out_k[:NT]                                          # drop row padding
    # Back to PyTorch NCHW: (N, O, T, V).
    return out_k.reshape(N, T, V, O).transpose(0, 3, 1, 2)


# ------------------------------- plain-JAX reference ------------------------------
def reference(x, A_powers, A_res, W_conv, b_conv, num_scales,
              bn_gamma, bn_beta, bn_mean, bn_var, eps=1e-5):
    N, C, T, V = x.shape
    S = num_scales
    A = A_powers + A_res
    support = jnp.einsum('vu,nctu->nctv', A, x)                 # (N, C, T, S*V)
    support = support.reshape(N, C, T, S, V)
    support = jnp.transpose(support, (0, 3, 1, 2, 4)).reshape(N, S * C, T, V)
    conv = jnp.einsum('ok,nktv->notv', W_conv, support) + b_conv[None, :, None, None]
    bn = (conv - bn_mean[None, :, None, None]) / jnp.sqrt(bn_var[None, :, None, None] + eps) \
         * bn_gamma[None, :, None, None] + bn_beta[None, :, None, None]
    return jnp.maximum(bn, 0.0)


if __name__ == "__main__":
    N, C, T, V = 2, 4, 8, 16   # batch, in_channels, temporal len, num joints
    S = 4                      # num_scales
    O = 32                     # out_channels

    # Deterministic "skeleton": chain graph over V joints (binary, symmetric).
    A_binary = np.zeros((V, V), dtype=np.float32)
    for i in range(V - 1):
        A_binary[i, i + 1] = 1.0
        A_binary[i + 1, i] = 1.0
    A_powers = jnp.asarray(build_A_powers(A_binary, S))         # (S*V, V)

    key = jax.random.PRNGKey(0)
    k_x, k_w, k_b, k_m = jax.random.split(key, 4)
    x = jax.random.normal(k_x, (N, C, T, V), dtype=jnp.float32)
    W_conv = jax.random.normal(k_w, (O, S * C), dtype=jnp.float32) * 0.1   # Conv2d(S*C, O, 1x1)
    b_conv = jax.random.normal(k_b, (O,), dtype=jnp.float32) * 0.1
    A_res = jax.random.uniform(k_m, (S * V, V), minval=-1e-6, maxval=1e-6,
                               dtype=jnp.float32)                          # use_mask=True

    # BatchNorm2d in eval mode with default running stats.
    bn_gamma = jnp.ones((O,), jnp.float32)
    bn_beta = jnp.zeros((O,), jnp.float32)
    bn_mean = jnp.zeros((O,), jnp.float32)
    bn_var = jnp.ones((O,), jnp.float32)

    out = multiscale_graphconv(x, A_powers, A_res, W_conv, b_conv, num_scales=S,
                               bn_gamma=bn_gamma, bn_beta=bn_beta,
                               bn_mean=bn_mean, bn_var=bn_var)
    out = jax.block_until_ready(out)

    ref = reference(x, A_powers, A_res, W_conv, b_conv, S,
                    bn_gamma, bn_beta, bn_mean, bn_var)
    assert out.shape == (N, O, T, V)
    np.testing.assert_allclose(np.asarray(out), np.asarray(ref), atol=1e-4, rtol=1e-4)
    print("KERNEL_OK")
</pallas_src>

<mosaic_0001>
module attributes {stable_mosaic.version = 11 : i64} {
  func.func @_msgcn_kernel(%arg0: i32, %arg1: memref<16x64xf32, #tpu.memory_space<vmem>>, %arg2: memref<64x512xf32, #tpu.memory_space<vmem>>, %arg3: memref<1x512xf32, #tpu.memory_space<vmem>>, %arg4: memref<16x512xf32, #tpu.memory_space<vmem>>) attributes {dimension_semantics = [#tpu.dimension_semantics<parallel>], iteration_bounds = array<i64: 1>, scalar_prefetch = 0 : i64, scratch_operands = 0 : i64, tpu.core_type = #tpu.core_type<tc>, window_params = [{transform_indices = @transform_0, window_bounds = array<i64: 16, 64>}, {pipeline_mode = #tpu.pipeline_mode<synchronous>, transform_indices = @transform_1, window_bounds = array<i64: 64, 512>}, {pipeline_mode = #tpu.pipeline_mode<synchronous>, transform_indices = @transform_2, window_bounds = array<i64: 1, 512>}, {transform_indices = @transform_3, window_bounds = array<i64: 16, 512>}]} {
    %c0 = arith.constant 0 : index
    %c0_0 = arith.constant 0 : index
    %0 = vector.load %arg1[%c0, %c0_0] : memref<16x64xf32, #tpu.memory_space<vmem>>, vector<16x64xf32>
    %c0_1 = arith.constant 0 : index
    %c0_2 = arith.constant 0 : index
    %1 = vector.load %arg2[%c0_1, %c0_2] : memref<64x512xf32, #tpu.memory_space<vmem>>, vector<64x512xf32>
    %cst = arith.constant dense<0.000000e+00> : vector<16x512xf32>
    %2 = tpu.matmul %0, %1, %cst {dimension_numbers = #tpu.dot_dimension_numbers<[1], [0], [0], [1], [0, 0, 1, 1], [], []>} : vector<16x64xf32>, vector<64x512xf32>, vector<16x512xf32> -> vector<16x512xf32>
    %c0_3 = arith.constant 0 : index
    %c0_4 = arith.constant 0 : index
    %3 = vector.load %arg3[%c0_3, %c0_4] : memref<1x512xf32, #tpu.memory_space<vmem>>, vector<1x512xf32>
    %4 = vector.broadcast %3 : vector<1x512xf32> to vector<16x512xf32>
    %5 = arith.addf %2, %4 : vector<16x512xf32>
    %cst_5 = arith.constant 0.000000e+00 : f32
    %6 = vector.broadcast %cst_5 : f32 to vector<16x512xf32>
    %7 = arith.maximumf %5, %6 : vector<16x512xf32>
    %c0_6 = arith.constant 0 : index
    %c0_7 = arith.constant 0 : index
    %8 = vector.load %arg4[%c0_6, %c0_7] : memref<16x512xf32, #tpu.memory_space<vmem>>, vector<16x512xf32>
    tpu.vector_store %arg4[%c0_6, %c0_7], %7 {strides = array<i32>} : memref<16x512xf32, #tpu.memory_space<vmem>>, vector<16x512xf32>,
    return
  }
  func.func @transform_0(%arg0: i32) -> (i32, i32) {
    %c0_i32 = arith.constant 0 : i32
    %c0_i32_0 = arith.constant 0 : i32
    return %arg0, %c0_i32 : i32, i32
  }
  func.func @transform_1(%arg0: i32) -> (i32, i32) {
    %c0_i32 = arith.constant 0 : i32
    %c0_i32_0 = arith.constant 0 : i32
    %c0_i32_1 = arith.constant 0 : i32
    return %c0_i32, %c0_i32_0 : i32, i32
  }
  func.func @transform_2(%arg0: i32) -> (i32, i32) {
    %c0_i32 = arith.constant 0 : i32
    %c0_i32_0 = arith.constant 0 : i32
    %c0_i32_1 = arith.constant 0 : i32
    return %c0_i32, %c0_i32_0 : i32, i32
  }
  func.func @transform_3(%arg0: i32) -> (i32, i32) {
    %c0_i32 = arith.constant 0 : i32
    %c0_i32_0 = arith.constant 0 : i32
    return %arg0, %c0_i32 : i32, i32
  }
}

</mosaic_0001>

<bundles_post_ra>
// kernel: tpu_custom_call.1
= control target key start
LH: loop header
LB: loop body
LE: loop exit
PB: predicated region body
PF: predicated region fallthrough
CT: control target
= control target key end

     0   :  { %8 = vsyncpa [#allocation3], 0  ;;  %s411_s0 = inlined_call_operand.hbm [shape: f32[16,64], index: 0, kind: input, shape index: {}]   ;;  %s412_s1 = inlined_call_operand.hbm [shape: f32[64,512], index: 1, kind: input, shape index: {}]   ;;  %s413_s2 = inlined_call_operand.hbm [shape: f32[1,512], index: 2, kind: input, shape index: {}]   ;;  %s414_s3 = inlined_call_operand.hbm [shape: f32[16,512], index: 3, kind: output, shape index: {}]  }
   0x1   :  { %9 = vsyncpa [#allocation6], 0  ;;  %s28_s14 = sshll.u32 %s412_s1, 4  ;;  %s29_s14 = int_to_ptr.hbm [resolvable:$true] %s28_s14 }
   0x2   :  { %10 = vsyncpa [#allocation4], 0  ;;  %s357_s15 = smov [#allocation5]   ;;  %s15_s19 = sshll.u32 %s411_s0, 4  ;;  %s16_s19 = int_to_ptr.hbm [resolvable:$true] %s15_s19 }
   0x3   :  { %s30_s16 = sshll.u32 %s357_s15, 4  ;;  %s358_s20 = smov 512   ;;  %s31_s16 = int_to_ptr.vmem [resolvable:$true] %s30_s16 }
   0x4   :  { %s359_s21 = smov 32   ;;  %s360_s22 = smov [#allocation2]  }
   0x5   :  { %36 = dma.hbm_to_vmem [thread:$0]  %s29_s14, 4096, %s31_s16, [#allocation6], %s358_s20, %s358_s20, %s359_s21  }
   0x6   :  { %s17_s23 = sshll.u32 %s360_s22, 4  ;;  %s361_s1 = smov 128   ;;  %s18_s23 = int_to_ptr.vmem [resolvable:$true] %s17_s23 }
   0x7   :  { %s362_s24 = smov 8   ;;  %s42_s27 = sshll.u32 %s413_s2, 4  ;;  %s43_s27 = int_to_ptr.hbm [resolvable:$true] %s42_s27 }
   0x8   :  { %23 = dma.hbm_to_vmem [thread:$0]  %s16_s19, 256, %s18_s23, [#allocation3], %s361_s1, %s361_s1, %s362_s24  }
   0x9   :  { %s363_s28 = smov [#allocation7]  }
   0xa   :  { %s44_s0 = sshll.u32 %s363_s28, 4  ;;  %s45_s0 = int_to_ptr.vmem [resolvable:$true] %s44_s0 }
   0xb   :  { %47 = dma.hbm_to_vmem [thread:$0]  %s43_s27, 64, %s45_s0, [#allocation6]  }
   0xc   :  { %351 = dma.done.wait [#allocation3], 256  }
   0xd   :  { %352 = vsyncadd [#allocation3], 4294967040 }
   0xe   :  { %353 = dma.done.wait [#allocation6], 4160  }
   0xf   :  { %354 = vsyncadd [#allocation6], 4294963136  ;;  %v92_v0 = vld [vmem:[#allocation5 + $0xf0] sm:$0xff]  ;;  %v93_v1 = vld [vmem:[#allocation5 + $0xf8] sm:$0xff]  ;;  %vm104_vm0 = vcmask 523264   ;;  %s364_s2 = smov [#allocation8]  }
  0x10   :  { %v88_v2 = vld [vmem:[#allocation5 + $0xd0] sm:$0xff]  ;;  %165 = vmatpush.msra.mxu2 %v92_v0  ;;  %188 = vmatpush.msra.mxu3 %v93_v1  ;;  %v89_v3 = vld [vmem:[#allocation5 + $0xd8] sm:$0xff]  ;;  %v90_v6 = vld [vmem:[#allocation5 + $0xe0] sm:$0xff]  ;;  %s223_s29 = sshll.u32 %s364_s2, 4  ;;  %s225_s5 = sshll.u32 %s414_s3, 4  ;;  %s224_s29 = int_to_ptr.vmem [resolvable:$true] %s223_s29  ;;  %s226_s5 = int_to_ptr.hbm [resolvable:$true] %s225_s5 }
  0x11   :  { %v84_v4 = vld [vmem:[#allocation5 + $0xb0] sm:$0xff]  ;;  %v85_v5 = vld [vmem:[#allocation5 + $0xb8] sm:$0xff]  ;;  %v91_v7 = vld [vmem:[#allocation5 + $0xe8] sm:$0xff]  ;;  %119 = vmatpush.msra.mxu0 %v90_v6 }
  0x12   :  { %166 = vmatpush.msra.mxu2 %v88_v2  ;;  %189 = vmatpush.msra.mxu3 %v89_v3  ;;  %v86_v8 = vld [vmem:[#allocation5 + $0xc0] sm:$0xff]  ;;  %v87_v9 = vld [vmem:[#allocation5 + $0xc8] sm:$0xff]  ;;  %v80_v10 = vld [vmem:[#allocation5 + $0x90] sm:$0xff] }
  0x13   :  { %142 = vmatpush.msra.mxu1 %v91_v7  ;;  %v81_v11 = vld [vmem:[#allocation5 + $0x98] sm:$0xff]  ;;  %v82_v12 = vld [vmem:[#allocation5 + $0xa0] sm:$0xff]  ;;  %v83_v13 = vld [vmem:[#allocation5 + $0xa8] sm:$0xff]  ;;  %120 = vmatpush.msra.mxu0 %v86_v8 }
  0x14   :  { %167 = vmatpush.msra.mxu2 %v84_v4  ;;  %190 = vmatpush.msra.mxu3 %v85_v5  ;;  %v76_v14 = vld [vmem:[#allocation5 + $0x70] sm:$0xff]  ;;  %v77_v15 = vld [vmem:[#allocation5 + $0x78] sm:$0xff]  ;;  %v78_v16 = vld [vmem:[#allocation5 + $0x80] sm:$0xff] }
  0x15   :  { %143 = vmatpush.msra.mxu1 %v87_v9  ;;  %v79_v17 = vld [vmem:[#allocation5 + $0x88] sm:$0xff]  ;;  %121 = vmatpush.msra.mxu0 %v82_v12  ;;  %v72_v18 = vld [vmem:[#allocation5 + $0x50] sm:$0xff]  ;;  %v73_v19 = vld [vmem:[#allocation5 + $0x58] sm:$0xff] }
  0x16   :  { %168 = vmatpush.msra.mxu2 %v80_v10  ;;  %191 = vmatpush.msra.mxu3 %v81_v11  ;;  %v74_v20 = vld [vmem:[#allocation5 + $0x60] sm:$0xff]  ;;  %v75_v21 = vld [vmem:[#allocation5 + $0x68] sm:$0xff]  ;;  %v68_v22 = vld [vmem:[#allocation5 + $0x30] sm:$0xff] }
  0x17   :  { %144 = vmatpush.msra.mxu1 %v83_v13  ;;  %122 = vmatpush.msra.mxu0 %v78_v16  ;;  %v69_v23 = vld [vmem:[#allocation5 + $0x38] sm:$0xff]  ;;  %v70_v24 = vld [vmem:[#allocation5 + $0x40] sm:$0xff]  ;;  %v71_v25 = vld [vmem:[#allocation5 + $0x48] sm:$0xff] }
  0x18   :  { %169 = vmatpush.msra.mxu2 %v76_v14  ;;  %192 = vmatpush.msra.mxu3 %v77_v15  ;;  %v64_v26 = vld [vmem:[#allocation5 + $0x10] sm:$0xff]  ;;  %v65_v27 = vld [vmem:[#allocation5 + $0x18] sm:$0xff]  ;;  %v66_v29 = vld [vmem:[#allocation5 + $0x20] sm:$0xff] }
  0x19   :  { %145 = vmatpush.msra.mxu1 %v79_v17  ;;  %123 = vmatpush.msra.mxu0 %v74_v20  ;;  %v60_v28 = vld [vmem:[#allocation2] sm:$0xff]  ;;  %v67_v30 = vld [vmem:[#allocation5 + $0x28] sm:$0xff]  ;;  %v62_v31 = vld [vmem:[#allocation5] sm:$0xff] }
  0x1a   :  { %170 = vmatpush.msra.mxu2 %v72_v18  ;;  %193 = vmatpush.msra.mxu3 %v73_v19  ;;  %v63_v32 = vld [vmem:[#allocation5 + $0x8] sm:$0xff]  ;;  %v61_v33 = vld [vmem:[#allocation2 + $0x8] sm:$0xff]  ;;  %v94_v34 = vld [vmem:[#allocation7] sm:$0xf] }
  0x1b   :  { %146 = vmatpush.msra.mxu1 %v75_v21  ;;  %124 = vmatpush.msra.mxu0 %v70_v24  ;;  %v96_v35 = vperm.slane %v94_v34, 0  ;;  %v97_v36 = vperm.slane %v94_v34, 1  ;;  %v98_v37 = vperm.slane %v94_v34, 2  ;;  %v99_v38 = vperm.slane %v94_v34, 3 }
  0x1c   :  { %171 = vmatpush.msra.mxu2 %v68_v22  ;;  %194 = vmatpush.msra.mxu3 %v69_v23 }
  0x1d   :  { %147 = vmatpush.msra.mxu1 %v71_v25  ;;  %125 = vmatpush.msra.mxu0 %v66_v29 }
  0x1e   :  { %172 = vmatpush.msra.mxu2 %v64_v26  ;;  %195 = vmatpush.msra.mxu3 %v65_v27 }
  0x1f   :  { %243 = vmatmul.msk.f32.vlgmr.msra.gmra.mxu2 %vm104_vm0, %v60_v28  ;;  %245 = vmatmul.msk.f32.vlgmr.msra.gmra.mxu3 %vm104_vm0, %v60_v28 }
  0x20   :  { %148 = vmatpush.msra.mxu1 %v67_v30  ;;  %126 = vmatpush.msra.mxu0 %v62_v31 }
  0x21   :  { %239 = vmatmul.msk.f32.vlgmr.msra.gmra.mxu0 %vm104_vm0, %v60_v28 }
  0x22   :  { %149 = vmatpush.msra.mxu1 %v63_v32 }
  0x23   :  { %241 = vmatmul.msk.f32.vlgmr.msra.gmra.mxu1 %vm104_vm0, %v60_v28 }
  0x27   :  { %244 = vmatmul.msk.f32.gmra.mxu2 %vm104_vm0, %v61_v33  ;;  %246 = vmatmul.msk.f32.gmra.mxu3 %vm104_vm0, %v61_v33 }
  0x29   :  { %240 = vmatmul.msk.f32.gmra.mxu0 %vm104_vm0, %v61_v33 }
  0x2b   :  { %242 = vmatmul.msk.f32.gmra.mxu1 %vm104_vm0, %v61_v33 }
  0x9e   :  { %v128_v39 = vpop.f32.mrf.mxu0 }
  0x9f   :  { %v129_v41 = vadd.f32 %v128_v39, %v96_v35 }
  0xa0   :  { %v151_v40 = vpop.f32.mrf.mxu1 }
  0xa1   :  { %v152_v42 = vadd.f32 %v151_v40, %v97_v36  ;;  %v203_v45 = vmax.f32 %v129_v41, 0.0 }
  0xa2   :  { %v174_v43 = vpop.f32.mrf.mxu2  ;;  %v197_v44 = vpop.f32.mrf.mxu3 }
  0xa3   :  { %v204_v46 = vmax.f32 %v152_v42, 0.0  ;;  %v175_v47 = vadd.f32 %v174_v43, %v98_v37  ;;  %v198_v48 = vadd.f32 %v197_v44, %v99_v38  ;;  %211 = vst [vmem:[#allocation8] sm:$0xff] %v203_v45 }
  0xa5   :  { %v205_v49 = vmax.f32 %v175_v47, 0.0  ;;  %v206_v50 = vmax.f32 %v198_v48, 0.0  ;;  %212 = vst [vmem:[#allocation8 + $0x8] sm:$0xff] %v204_v46 }
  0xa6   :  { %v131_v51 = vpop.f32.mrf.mxu0 }
  0xa7   :  { %213 = vst [vmem:[#allocation8 + $0x10] sm:$0xff] %v205_v49  ;;  %v132_v53 = vadd.f32 %v131_v51, %v96_v35 }
  0xa8   :  { %214 = vst [vmem:[#allocation8 + $0x18] sm:$0xff] %v206_v50  ;;  %v154_v52 = vpop.f32.mrf.mxu1 }
  0xa9   :  { %v155_v54 = vadd.f32 %v154_v52, %v97_v36  ;;  %v207_v57 = vmax.f32 %v132_v53, 0.0 }
  0xaa   :  { %v177_v55 = vpop.f32.mrf.mxu2  ;;  %v200_v56 = vpop.f32.mrf.mxu3 }
  0xab   :  { %v208_v58 = vmax.f32 %v155_v54, 0.0  ;;  %v178_v59 = vadd.f32 %v177_v55, %v98_v37  ;;  %v201_v60 = vadd.f32 %v200_v56, %v99_v38  ;;  %215 = vst [vmem:[#allocation8 + $0x20] sm:$0xff] %v207_v57 }
  0xad   :  { %v209_v61 = vmax.f32 %v178_v59, 0.0  ;;  %v210_v62 = vmax.f32 %v201_v60, 0.0  ;;  %216 = vst [vmem:[#allocation8 + $0x28] sm:$0xff] %v208_v58 }
  0xaf   :  { %217 = vst [vmem:[#allocation8 + $0x30] sm:$0xff] %v209_v61 }
  0xb0   :  { %218 = vst [vmem:[#allocation8 + $0x38] sm:$0xff] %v210_v62 }
  0xb1   :  { %231 = dma.vmem_to_hbm [thread:$0]  %s224_s29, 1024, %s226_s5, [#allocation4], %s358_s20, %s358_s20, %s359_s21  }
  0xb2   :  { %355 = dma.done.wait [#allocation4], 1024  }
  0xb3   :  { %356 = vsyncadd [#allocation4], 4294966272 }
  0xb4   :  { %236 = vsyncpa [#allocation3], 1 }
  0xb5   :  { %237 = vsyncpa [#allocation6], 1 }
  0xb6   :  { %238 = vsyncpa [#allocation4], 1 }

</bundles_post_ra>
